<compile_context>
chip_gen: v5e
topology: v5e:2x2
jax: 0.10.0
libtpu: 0.0.40
codegen_flags: <defaults>
</compile_context>

<pallas_src>
import jax
import jax.numpy as jnp
from jax.experimental import pallas as pl
from jax.experimental.pallas import tpu as pltpu

DIM = 5
N_K = 1


def _attn_shrink_kernel(x_ref, w1_ref, b1_ref, w2_ref, b2_ref, o_ref):
    # x_ref : (Cin, T)  pixel tile — channels on sublanes, pixels on lanes (f32)
    # w1_ref: (Cin, Cin) BN-folded conv_1 weight (f32)
    # b1_ref: (Cin, 1)   BN-folded bias (f32)
    # w2_ref: (OC, Cin)  shrink conv weight (f32)
    # b2_ref: (OC, 1)    shrink bias (f32)
    # o_ref : (OC, T)    lane-dense output tile
    h = jnp.dot(w1_ref[...], x_ref[...], preferred_element_type=jnp.float32)
    h = jnp.maximum(h + b1_ref[...], 0.0)
    # Dropout: eval-mode identity.
    # TODO(synk): training-mode dropout (random mask + 1/(1-p) scaling) not implemented.
    y = jnp.dot(w2_ref[...], h, preferred_element_type=jnp.float32)
    o_ref[...] = (y + b2_ref[...]).astype(o_ref.dtype)


def _pick_tile_hw(hw, batch, max_tile=32768):
    """Large lane tile to amortize per-grid-step overhead.

    - full extent if it fits max_tile (always a legal block shape),
    - else the largest 128-multiple divisor of HW not exceeding max_tile,
    - else a fixed 128-multiple tile (ragged tail handled by cdiv grid +
      masked out-of-bounds stores on the final block),
    - and keep at least 2 total grid blocks so both v7x TensorCores get work.
    """
    max_tile = max(128, (max_tile // 128) * 128)
    if hw <= max_tile:
        tile = hw
    else:
        tile = None
        for t in range(max_tile, 127, -128):
            if hw % t == 0:
                tile = t
                break
        if tile is None:
            tile = max_tile  # ragged tail: cdiv grid, last block OOB-masked
    if batch * pl.cdiv(hw, tile) < 2 and hw >= 256:
        tile = ((pl.cdiv(hw, 2) + 127) // 128) * 128
    return tile


def attn_shrink_forward(x_nchw, params, *, max_tile_hw=32768,
                        out_dtype=jnp.float32):
    """x_nchw: (B, Cin, H, W) f32.  Returns (B, OC*H//DIM, DIM, 1, W) out_dtype."""
    B, Cin, H, W = x_nchw.shape
    w1 = params["w1_eff"]                         # (Cin, Cin) f32
    b1 = params["b1"]                             # (Cin, 1)   f32
    w2 = params["w2"]                             # (OC, Cin)  f32
    b2 = params["b2"]                             # (OC, 1)    f32
    OC = w2.shape[0]

    HW = H * W
    tile = _pick_tile_hw(HW, B, max_tile_hw)
    grid = (B, pl.cdiv(HW, tile))

    # Free contiguous reshape; NO dtype cast -> no separate HBM pass over x.
    x = x_nchw.reshape(B, Cin, HW)

    out_isize = jnp.dtype(out_dtype).itemsize
    cost = pl.CostEstimate(
        flops=2 * B * HW * (Cin * Cin + Cin * OC),
        transcendentals=0,
        bytes_accessed=B * HW * (Cin * 4 + OC * out_isize)
        + (Cin * Cin + OC * Cin + Cin + OC) * 4,
    )

    # Double-buffered VMEM footprint for the big tiles (f32, sublane-padded);
    # cap well under v7x's 64 MiB physical VMEM, floor at the 16 MiB v5e default.
    cin_pad = -(-Cin // 8) * 8
    oc_pad = -(-OC // 8) * 8
    vmem_need = 2 * tile * 4 * (cin_pad + oc_pad) + (2 << 20)
    vmem_limit = int(min(max(vmem_need, 16 << 20), 48 << 20))

    out = pl.pallas_call(
        _attn_shrink_kernel,
        out_shape=jax.ShapeDtypeStruct((B, OC, HW), out_dtype),
        grid_spec=pltpu.PrefetchScalarGridSpec(
            num_scalar_prefetch=0,
            grid=grid,
            in_specs=[
                pl.BlockSpec((None, Cin, tile), lambda b, t: (b, 0, t)),  # x tile
                pl.BlockSpec((Cin, Cin), lambda b, t: (0, 0)),            # W1_eff
                pl.BlockSpec((Cin, 1), lambda b, t: (0, 0)),              # b1
                pl.BlockSpec((OC, Cin), lambda b, t: (0, 0)),             # W2
                pl.BlockSpec((OC, 1), lambda b, t: (0, 0)),               # b2
            ],
            out_specs=pl.BlockSpec((None, OC, tile), lambda b, t: (b, 0, t)),
        ),
        compiler_params=pltpu.CompilerParams(
            dimension_semantics=("parallel", "parallel"),
            vmem_limit_bytes=vmem_limit),
        cost_estimate=cost,
    )(x, w1, b1, w2, b2)

    # (B, OC, H*W) is already contiguous NCHW; the final .view is a free reshape.
    return out.reshape(B, (OC * H) // DIM, DIM, 1, W)


def make_params(key, in_channels, out_channels, eps=1e-5):
    assert out_channels % (N_K * DIM) == 0
    oc = out_channels // N_K
    k1, k2, k3, k4, k5, k6, k7 = jax.random.split(key, 7)
    # conv_1: Conv2d(Cin, Cin, 1, bias=False)
    w1 = jax.random.normal(k1, (in_channels, in_channels), jnp.float32) * 0.1
    # BatchNorm2d (eval-mode running stats)
    gamma = 1.0 + 0.1 * jax.random.normal(k2, (in_channels,), jnp.float32)
    beta = 0.1 * jax.random.normal(k3, (in_channels,), jnp.float32)
    run_mean = 0.1 * jax.random.normal(k4, (in_channels,), jnp.float32)
    run_var = jnp.abs(jax.random.normal(k5, (in_channels,), jnp.float32)) + 0.5
    # shrink: Conv2d(Cin, oc, 1, bias=True)
    w2 = jax.random.normal(k6, (oc, in_channels), jnp.float32) * 0.1
    b2 = 0.1 * jax.random.normal(k7, (oc,), jnp.float32)

    bn_scale = gamma / jnp.sqrt(run_var + eps)
    bn_shift = beta - run_mean * bn_scale
    return {
        # BN folded into conv_1 (kernel computes W2 @ relu(W1_eff x + b1) + b2).
        "w1_eff": w1 * bn_scale[:, None],   # (Cin, Cin): per-output-channel scale
        "b1": bn_shift.reshape(-1, 1),      # (Cin, 1)
        "w2": w2,                           # (OC, Cin)
        "b2": b2.reshape(-1, 1),            # (OC, 1)
        # Raw params kept for the plain-JAX reference (un-folded BN).
        "raw": dict(w1=w1, gamma=gamma, beta=beta, mean=run_mean,
                    var=run_var, eps=eps, w2=w2, b2=b2),
    }


def reference_forward(x_nchw, params):
    """Plain-JAX f32 reference of the same eval-mode forward (un-folded BN)."""
    raw = params["raw"]
    B, Cin, H, W = x_nchw.shape
    x = x_nchw.reshape(B, Cin, H * W)
    h = jnp.einsum("oi,bip->bop", raw["w1"], x,
                   preferred_element_type=jnp.float32)
    scale = raw["gamma"] / jnp.sqrt(raw["var"] + raw["eps"])
    shift = raw["beta"] - raw["mean"] * scale
    h = jnp.maximum(h * scale[None, :, None] + shift[None, :, None], 0.0)
    y = jnp.einsum("oi,bip->bop", raw["w2"], h,
                   preferred_element_type=jnp.float32) + raw["b2"][None, :, None]
    OC = y.shape[1]
    return y.reshape(B, (OC * H) // DIM, DIM, 1, W)


if __name__ == "__main__":
    key = jax.random.PRNGKey(0)
    kx, kp = jax.random.split(key)

    B, Cin, H, W = 2, 8, 16, 16
    out_channels = 10  # divisible by N_K * DIM = 5

    x = jax.random.normal(kx, (B, Cin, H, W), jnp.float32)
    params = make_params(kp, Cin, out_channels)

    out = jax.block_until_ready(attn_shrink_forward(x, params))
    ref = reference_forward(x, params)

    assert out.shape == (B, (out_channels * H) // DIM, DIM, 1, W), out.shape
    # All-f32 path (f32 MXU accumulation) -> tight tolerance vs the reference.
    assert jnp.allclose(out, ref, atol=1e-3, rtol=1e-3), \
        float(jnp.max(jnp.abs(out - ref)))

    print("KERNEL_OK")
</pallas_src>

<mosaic_0001>
module attributes {stable_mosaic.version = 11 : i64} {
  func.func @_attn_shrink_kernel(%arg0: i32, %arg1: i32, %arg2: memref<1x8x256xf32, #tpu.memory_space<vmem>>, %arg3: memref<8x8xf32, #tpu.memory_space<vmem>>, %arg4: memref<8x1xf32, #tpu.memory_space<vmem>>, %arg5: memref<10x8xf32, #tpu.memory_space<vmem>>, %arg6: memref<10x1xf32, #tpu.memory_space<vmem>>, %arg7: memref<1x10x256xf32, #tpu.memory_space<vmem>>) attributes {dimension_semantics = [#tpu.dimension_semantics<parallel>, #tpu.dimension_semantics<parallel>], iteration_bounds = array<i64: 2, 1>, scalar_prefetch = 0 : i64, scratch_operands = 0 : i64, tpu.core_type = #tpu.core_type<tc>, window_params = [{transform_indices = @transform_0, window_bounds = array<i64: 1, 8, 256>}, {pipeline_mode = #tpu.pipeline_mode<synchronous>, transform_indices = @transform_1, window_bounds = array<i64: 8, 8>}, {pipeline_mode = #tpu.pipeline_mode<synchronous>, transform_indices = @transform_2, window_bounds = array<i64: 8, 1>}, {pipeline_mode = #tpu.pipeline_mode<synchronous>, transform_indices = @transform_3, window_bounds = array<i64: 10, 8>}, {pipeline_mode = #tpu.pipeline_mode<synchronous>, transform_indices = @transform_4, window_bounds = array<i64: 10, 1>}, {transform_indices = @transform_5, window_bounds = array<i64: 1, 10, 256>}]} {
    %c0 = arith.constant 0 : index
    %c0_0 = arith.constant 0 : index
    %0 = vector.load %arg3[%c0, %c0_0] : memref<8x8xf32, #tpu.memory_space<vmem>>, vector<8x8xf32>
    %c0_1 = arith.constant 0 : index
    %c0_2 = arith.constant 0 : index
    %c0_3 = arith.constant 0 : index
    %1 = vector.load %arg2[%c0_1, %c0_2, %c0_3] : memref<1x8x256xf32, #tpu.memory_space<vmem>>, vector<1x8x256xf32>
    %2 = vector.shape_cast %1 : vector<1x8x256xf32> to vector<8x256xf32>
    %cst = arith.constant dense<0.000000e+00> : vector<8x256xf32>
    %3 = tpu.matmul %0, %2, %cst {dimension_numbers = #tpu.dot_dimension_numbers<[1], [0], [0], [1], [0, 0, 1, 1], [], []>} : vector<8x8xf32>, vector<8x256xf32>, vector<8x256xf32> -> vector<8x256xf32>
    %c0_4 = arith.constant 0 : index
    %c0_5 = arith.constant 0 : index
    %4 = vector.load %arg4[%c0_4, %c0_5] : memref<8x1xf32, #tpu.memory_space<vmem>>, vector<8x1xf32>
    %5 = vector.broadcast %4 : vector<8x1xf32> to vector<8x256xf32>
    %6 = arith.addf %3, %5 : vector<8x256xf32>
    %cst_6 = arith.constant 0.000000e+00 : f32
    %7 = vector.broadcast %cst_6 : f32 to vector<8x256xf32>
    %8 = arith.maximumf %6, %7 : vector<8x256xf32>
    %c0_7 = arith.constant 0 : index
    %c0_8 = arith.constant 0 : index
    %9 = vector.load %arg5[%c0_7, %c0_8] : memref<10x8xf32, #tpu.memory_space<vmem>>, vector<10x8xf32>
    %cst_9 = arith.constant dense<0.000000e+00> : vector<10x256xf32>
    %10 = tpu.matmul %9, %8, %cst_9 {dimension_numbers = #tpu.dot_dimension_numbers<[1], [0], [0], [1], [0, 0, 1, 1], [], []>} : vector<10x8xf32>, vector<8x256xf32>, vector<10x256xf32> -> vector<10x256xf32>
    %c0_10 = arith.constant 0 : index
    %c0_11 = arith.constant 0 : index
    %11 = vector.load %arg6[%c0_10, %c0_11] : memref<10x1xf32, #tpu.memory_space<vmem>>, vector<10x1xf32>
    %12 = vector.broadcast %11 : vector<10x1xf32> to vector<10x256xf32>
    %13 = arith.addf %10, %12 : vector<10x256xf32>
    %c0_12 = arith.constant 0 : index
    %c0_13 = arith.constant 0 : index
    %c0_14 = arith.constant 0 : index
    %14 = vector.load %arg7[%c0_12, %c0_13, %c0_14] : memref<1x10x256xf32, #tpu.memory_space<vmem>>, vector<1x10x256xf32>
    %15 = vector.shape_cast %14 : vector<1x10x256xf32> to vector<10x256xf32>
    %16 = vector.shape_cast %13 : vector<10x256xf32> to vector<1x10x256xf32>
    tpu.vector_store %arg7[%c0_12, %c0_13, %c0_14], %16 {strides = array<i32>} : memref<1x10x256xf32, #tpu.memory_space<vmem>>, vector<1x10x256xf32>,
    return
  }
  func.func @transform_0(%arg0: i32, %arg1: i32) -> (i32, i32, i32) {
    %c0_i32 = arith.constant 0 : i32
    %c0_i32_0 = arith.constant 0 : i32
    return %arg0, %c0_i32, %arg1 : i32, i32, i32
  }
  func.func @transform_1(%arg0: i32, %arg1: i32) -> (i32, i32) {
    %c0_i32 = arith.constant 0 : i32
    %c0_i32_0 = arith.constant 0 : i32
    %c0_i32_1 = arith.constant 0 : i32
    return %c0_i32, %c0_i32_0 : i32, i32
  }
  func.func @transform_2(%arg0: i32, %arg1: i32) -> (i32, i32) {
    %c0_i32 = arith.constant 0 : i32
    %c0_i32_0 = arith.constant 0 : i32
    %c0_i32_1 = arith.constant 0 : i32
    return %c0_i32, %c0_i32_0 : i32, i32
  }
  func.func @transform_3(%arg0: i32, %arg1: i32) -> (i32, i32) {
    %c0_i32 = arith.constant 0 : i32
    %c0_i32_0 = arith.constant 0 : i32
    %c0_i32_1 = arith.constant 0 : i32
    return %c0_i32, %c0_i32_0 : i32, i32
  }
  func.func @transform_4(%arg0: i32, %arg1: i32) -> (i32, i32) {
    %c0_i32 = arith.constant 0 : i32
    %c0_i32_0 = arith.constant 0 : i32
    %c0_i32_1 = arith.constant 0 : i32
    return %c0_i32, %c0_i32_0 : i32, i32
  }
  func.func @transform_5(%arg0: i32, %arg1: i32) -> (i32, i32, i32) {
    %c0_i32 = arith.constant 0 : i32
    %c0_i32_0 = arith.constant 0 : i32
    return %arg0, %c0_i32, %arg1 : i32, i32, i32
  }
}

</mosaic_0001>

<bundles_post_ra>
// kernel: tpu_custom_call.1
= control target key start
LH: loop header
LB: loop body
LE: loop exit
PB: predicated region body
PF: predicated region fallthrough
CT: control target
= control target key end

     0   :  { %s577_s18 = smov 0   ;;  %s579_s19 = smov 0   ;;  %s638_s0 = inlined_call_operand.vmem [shape: f32[2,8,256], index: 0, kind: input, shape index: {}]   ;;  %s639_s1 = inlined_call_operand.vmem [shape: f32[8,8], index: 1, kind: input, shape index: {}]   ;;  %s640_s2 = inlined_call_operand.vmem [shape: f32[8,1], index: 2, kind: input, shape index: {}]   ;;  %s641_s3 = inlined_call_operand.vmem [shape: f32[10,8], index: 3, kind: input, shape index: {}]   ;;  %s642_s4 = inlined_call_operand.vmem [shape: f32[10,1], index: 4, kind: input, shape index: {}]   ;;  %s643_s5 = inlined_call_operand.vmem [shape: f32[2,10,256], index: 5, kind: output, shape index: {}]  }
   0x1   :  { %s581_s20 = smov 0  }
   0x2 LB: > { %s27_s21 = sadd.s32 1, %s540_s19  ;;  %p480_p0 = scmp.ge.s32.totalorder %s544_s20, 1  ;;  %s544_s20 = sphi %s581_s20, %s15_s20   ;;  %s540_s19 = sphi %s579_s19, %s645_s19   ;;  %s536_s18 = sphi %s577_s18, %s644_s18  }
   0x3   : > { %p29_p1 = scmp.ge.s32.totalorder %s27_s21, 2  ;;  %p208_p2 = scmp.lt.s32.totalorder %s544_s20, 3 }
   0x5   : > { %s647_s21 = smov (%p29_p1, %s27_s21), 0  ;;  %p209_p3 = pnand %p480_p0, %p208_p2 }
   0x6   : > { %p245_p4 = scmp.lt.s32.totalorder (!%p209_p3), %s536_s18, 1 }
   0x7   : > { %212 = sbr.rel (%p209_p3) target bundleno = 292 (0x124), region = 40 }
   0xc   : > { %v267_v0 = vld [vmem:[%s640_s2] sm:$0xff]  ;;  %v546_v1 = vmov 0   ;;  %s649_s18 = smov (!%p245_p4, %s536_s18), 1  ;;  %vm273_vm0 = vcmask 64512   ;;  %v322_v6 = vld [vmem:[%s642_s4 + $0x8] sm:$0x3] }
   0xd   : > { %520 = vset.pattern.permute.xlu0 %v546_v1  ;;  %521 = vset.pattern.permute.xlu1 %v546_v1  ;;  %s493_s24 = sshll.u32 %s649_s18, 4  ;;  %v264_v2 = vld [vmem:[%s639_s1] sm:$0xff]  ;;  %v320_v15 = vld [vmem:[%s641_s3 + $0x8] sm:$0x3]  ;;  %s494_s13 = sshll.u32 %s649_s18, 5 }
   0xe   : > { %270 = vperm.xlu0 %520, %v267_v0   ;;  %s252_s27 = scalar_lea.vmem %s638_s0, %s493_s24  ;;  %v321_v5 = vld [vmem:[%s642_s4] sm:$0xff]  ;;  %330 = vperm.xlu1 %521, %v322_v6   ;;  %s262_s16 = scalar_lea.vmem %s643_s5, %s494_s13 }
   0xf   : > { %v265_v3 = vld [vmem:[%s252_s27] sm:$0xff]  ;;  %v266_v4 = vld [vmem:[%s252_s27 + $0x8] sm:$0xff] }
  0x10   : > { %292 = vmatpush.msra.mxu0 %v265_v3  ;;  %312 = vmatpush.msra.mxu1 %v266_v4  ;;  %v319_v14 = vld [vmem:[%s641_s3] sm:$0xff] }
  0x11   : > { %485 = vmatmul.msk.f32.vlgmr.msra.gmra.mxu0 %vm273_vm0, %v264_v2  ;;  %486 = vmatmul.msk.f32.vlgmr.msra.gmra.mxu1 %vm273_vm0, %v264_v2 }
  0x16   : > { %325 = vperm.xlu0 %520, %v321_v5  }
  0x80   : > { %v271_v7 = vpop.permute.xlu0 %270  ;;  %v331_v21 = vpop.permute.xlu1 %330 }
  0x88   : > { %v326_v16 = vpop.permute.xlu0 %325 }
  0x8e   : > { %v294_v8 = vpop.f32.mrf.mxu0  ;;  %v314_v9 = vpop.f32.mrf.mxu1 }
  0x8f   : > { %v295_v10 = vadd.f32 %v294_v8, %v271_v7  ;;  %v315_v11 = vadd.f32 %v314_v9, %v271_v7 }
  0x91   : > { %v317_v12 = vmax.f32 %v295_v10, 0.0  ;;  %v318_v13 = vmax.f32 %v315_v11, 0.0 }
  0x93   : > { %354 = vmatpush.msra.mxu2 %v317_v12  ;;  %377 = vmatpush.msra.mxu3 %v318_v13 }
  0x94   : > { %487 = vmatmul.msk.f32.vlgmr.msra.gmra.mxu2 %vm273_vm0, %v319_v14  ;;  %489 = vmatmul.msk.f32.vlgmr.msra.gmra.mxu3 %vm273_vm0, %v319_v14 }
  0x9c   : > { %488 = vmatmul.msk.f32.gmra.mxu2 %vm273_vm0, %v320_v15  ;;  %490 = vmatmul.msk.f32.gmra.mxu3 %vm273_vm0, %v320_v15 }
 0x117   : > { %v356_v17 = vpop.f32.mrf.mxu2  ;;  %v379_v18 = vpop.f32.mrf.mxu3 }
 0x118   : > { %v357_v19 = vadd.f32 %v356_v17, %v326_v16  ;;  %v380_v20 = vadd.f32 %v379_v18, %v326_v16 }
 0x11a   : > { %385 = vst [vmem:[%s262_s16] sm:$0xff] %v357_v19 }
 0x11b   : > { %386 = vst [vmem:[%s262_s16 + $0x8] sm:$0xff] %v380_v20 }
 0x11f   : > { %v359_v22 = vpop.f32.mrf.mxu2  ;;  %v382_v23 = vpop.f32.mrf.mxu3 }
 0x120   : > { %v360_v24 = vadd.f32 %v359_v22, %v331_v21  ;;  %v383_v25 = vadd.f32 %v382_v23, %v331_v21 }
 0x122   : > { %387 = vst [vmem:[%s262_s16 + $0x10] sm:$0x3] %v360_v24 }
 0x123   : > { %388 = vst [vmem:[%s262_s16 + $0x18] sm:$0x3] %v383_v25 }
 0x124 PF: > { %s15_s20 = sadd.s32 1, %s544_s20   ;;  %s644_s18 = smov %s540_s19 }
 0x125   : > { %p12_p5 = scmp.ge.s32.totalorder %s15_s20, 4   ;;  %s645_s19 = smov %s647_s21 }
 0x127   :  { %14 = sbr.rel (!%p12_p5) target bundleno = 2 (0x2), region = 70 }

</bundles_post_ra>
